<compile_context>
chip_gen: v7x
topology: tpu7x:2x2x1
jax: 0.10.0
libtpu: 0.0.40
codegen_flags: <defaults>
</compile_context>

<pallas_src>
import jax
import jax.numpy as jnp
from jax.experimental import pallas as pl
from jax.experimental.pallas import tpu as pltpu


# --------------------------------------------------------------------------- #
# Kernel
# --------------------------------------------------------------------------- #
def _center_loss_kernel(x_ref, c_ref, lab_ref, dist_ref):
    tb = x_ref.shape[0]
    C = c_ref.shape[0]

    c = c_ref[...]                                              # (C, D) f32, pre-normalized
    labels = lab_ref[...]                                       # (tb, 1) int32
    classes = jax.lax.broadcasted_iota(jnp.int32, (tb, C), 1)   # (tb, C)
    mask = (labels == classes).astype(c.dtype)                  # one-hot rows

    # Gather each sample's own center row with a single MXU matmul.
    c_sel = jnp.dot(mask, c, preferred_element_type=jnp.float32)   # (tb, D) f32

    diff = x_ref[...].astype(jnp.float32) - c_sel
    d2 = jnp.sum(diff * diff, axis=1, keepdims=True)                # (tb, 1) >= 0
    dist_ref[...] = jnp.sqrt(d2 + 1e-14).astype(dist_ref.dtype)


# --------------------------------------------------------------------------- #
# Tiling / VMEM planning helpers
# --------------------------------------------------------------------------- #
def _round_up(v, m):
    return ((v + m - 1) // m) * m


def _sublane_multiple(dtype):
    """Dtype-native sublane packing multiple: 8 (f32), 16 (bf16), 32 (int8/fp8)."""
    return max(8, 32 // max(1, jnp.dtype(dtype).itemsize))


def _vmem_plan():
    """Generation-aware scoped-VMEM plan -> (vmem_limit_bytes, tiling_budget_bytes).

    Physical VMEM is 128 MiB/TC on v5e/v6e and 64 MiB/TC on v7x, but the
    *default scoped* limit is only 16 MiB (v5e) / 32 MiB (v6e/v7x), so the
    limit is pinned explicitly and the batch-tile budget is derived from it
    (with headroom for Mosaic-internal scratch and compiler temps).
    """
    phys = 64 << 20                                  # conservative fallback (v7x-sized)
    try:
        phys = int(getattr(pltpu.get_tpu_info(), "vmem_capacity_bytes", phys)) or phys
    except Exception:
        pass
    limit = max(32 << 20, min(phys - (16 << 20), 100 << 20))
    budget = (limit * 4) // 5                        # ~20% headroom under the pinned limit
    return limit, budget


def _pick_block_b(B, C, D, x_itemsize, c_itemsize, budget_bytes, sublane):
    """Largest sublane-aligned batch tile whose double-buffered working set fits
    the VMEM budget, capped so the batch grid has >= 2 steps (v7x megacore)."""
    if B <= sublane:
        return B                                     # single full-batch tile
    per_row = (2 * D * x_itemsize                    # x tile, double-buffered
               + 2 * 4 + 2 * 4                       # labels + dist columns, double-buffered
               + C * 4                               # (tb, C) one-hot mask, f32
               + 4 * D * 4)                          # x_f32 / c_sel / diff / diff^2 temps
    fixed = C * D * c_itemsize                       # resident (single-buffered) centers
    tb_budget = max(sublane, (budget_bytes - fixed) // per_row)
    tb_grid2 = _round_up(pl.cdiv(B, 2), sublane)     # ensure grid >= 2 steps
    tb = min(tb_budget, tb_grid2, B)
    tb = max(sublane, (tb // sublane) * sublane)
    return min(tb, B)


# --------------------------------------------------------------------------- #
# Wrapper
# --------------------------------------------------------------------------- #
def center_loss(x, labels, centers, *, alpha=10.0, partion=0.9, block_b=None):
    """Pallas implementation of CenterLoss.forward(x, labels)."""
    B, D = x.shape
    C, Dc = centers.shape
    assert D == Dc

    # Hoisted center renormalization: c / (||c||_2 + 1e-14) * alpha, done once
    # per call (not once per batch tile) and kept in f32 so low-precision
    # parameters do not pick up an extra rounding step.
    c32 = centers.astype(jnp.float32)
    norms = jnp.sqrt(jnp.sum(c32 * c32, axis=1, keepdims=True)) + 1e-14
    centers_n = c32 * (alpha / norms)                # (C, D) f32

    labels2d = labels.astype(jnp.int32).reshape(B, 1)

    vmem_limit, vmem_budget = _vmem_plan()
    sublane = _sublane_multiple(x.dtype)
    if block_b is None:
        tb = _pick_block_b(B, C, D, x.dtype.itemsize, centers_n.dtype.itemsize,
                           vmem_budget, sublane)
    else:
        tb = min(int(block_b), B)
        assert tb == B or tb % sublane == 0, (
            f"block_b must be a multiple of {sublane} (x-dtype sublane packing) or == batch")
    grid = (pl.cdiv(B, tb),)

    def run(single_buffer_centers):
        centers_kwargs = (
            {"pipeline_mode": pl.Buffered(1)} if single_buffer_centers else {}
        )
        return pl.pallas_call(
            _center_loss_kernel,
            out_shape=jax.ShapeDtypeStruct((B, 1), jnp.float32),
            grid=grid,
            in_specs=[
                pl.BlockSpec((tb, D), lambda i: (i, 0)),                    # x tile
                pl.BlockSpec((C, D), lambda i: (0, 0), **centers_kwargs),   # resident centers
                pl.BlockSpec((tb, 1), lambda i: (i, 0)),                    # labels tile
            ],
            out_specs=pl.BlockSpec((tb, 1), lambda i: (i, 0)),
            compiler_params=pltpu.CompilerParams(
                dimension_semantics=("parallel",),   # shard batch grid across v7x's 2 TCs
                vmem_limit_bytes=vmem_limit,         # pin scoped VMEM (v5e default is 16 MiB)
            ),
        )(x, centers_n, labels2d)

    try:
        dist = run(single_buffer_centers=True)
    except Exception:
        # jax version without pipeline_mode / Buffered(1) support on TPU block
        # specs: fall back to default double-buffered centers (one extra C*D
        # tile of VMEM, already covered by the headroom in the budget).
        dist = run(single_buffer_centers=False)

    dist = dist[:, 0]                                # (B,) per-sample distances

    # TODO(synk): argsort/top-k tail selection has no clean Pallas equivalent;
    # done in plain JAX (sum of the k largest == torch's index_select over
    # argsort(...)[-k:]).  Note: k is clamped to >= 1, which differs from the
    # torch module (division by zero) only when int(partion * B) == 0.
    k = max(int(partion * B), 1)
    topk = jax.lax.top_k(dist, k)[0]
    return jnp.sum(jnp.clip(topk, 1e-12, 1e12)) / k


# --------------------------------------------------------------------------- #
# Reference + demo
# --------------------------------------------------------------------------- #
def _reference_loss(x, labels, centers, *, alpha=10.0, partion=0.9):
    """Plain-JAX port of the PyTorch forward (same formulation as torch)."""
    c = centers / (jnp.linalg.norm(centers, axis=1, keepdims=True) + 1e-14) * alpha
    distmat = (jnp.sum(x * x, axis=1, keepdims=True)
               + jnp.sum(c * c, axis=1)[None, :]
               - 2.0 * x @ c.T)
    mask = (labels[:, None] == jnp.arange(c.shape[0])[None, :]).astype(x.dtype)
    dist = jnp.sqrt(jnp.sum(distmat * mask, axis=1) + 1e-14)
    k = int(partion * x.shape[0])
    topk = jax.lax.top_k(dist, k)[0]
    return jnp.sum(jnp.clip(topk, 1e-12, 1e12)) / k


if __name__ == "__main__":
    B, C, D = 16, 10, 32          # batch, num_classes, feat_dim
    alpha, partion = 10.0, 0.9

    key = jax.random.PRNGKey(0)
    kx, kl, kc = jax.random.split(key, 3)

    x = jax.random.normal(kx, (B, D), jnp.float32)
    labels = jax.random.randint(kl, (B,), 0, C, jnp.int32)

    # Deterministic emulation of the torch init:
    #   randn -> uniform_(-1, 1) -> renorm_(2, dim=1, 1e-5) -> mul_(1e5)
    centers = jax.random.uniform(kc, (C, D), jnp.float32, -1.0, 1.0)
    col_norm = jnp.sqrt(jnp.sum(centers * centers, axis=0, keepdims=True))
    scale = jnp.where(col_norm > 1e-5, 1e-5 / (col_norm + 1e-7), 1.0)
    centers = centers * scale * 1e5

    # Auto tiling picks tb=8 here (grid >= 2 cap), so the pipelined / parallel
    # batch-grid path is exercised even at this small demo size.
    loss = center_loss(x, labels, centers, alpha=alpha, partion=partion)
    jax.block_until_ready(loss)

    ref = _reference_loss(x, labels, centers, alpha=alpha, partion=partion)
    assert jnp.allclose(loss, ref, rtol=1e-4, atol=1e-4), (loss, ref)

    print("KERNEL_OK")
</pallas_src>

<mosaic_0001>
module attributes {stable_mosaic.version = 11 : i64} {
  func.func @_center_loss_kernel(%arg0: i32, %arg1: memref<8x32xf32, #tpu.memory_space<vmem>>, %arg2: memref<10x32xf32, #tpu.memory_space<vmem>>, %arg3: memref<8x1xi32, #tpu.memory_space<vmem>>, %arg4: memref<8x1xf32, #tpu.memory_space<vmem>>) attributes {dimension_semantics = [#tpu.dimension_semantics<parallel>], iteration_bounds = array<i64: 2>, scalar_prefetch = 0 : i64, scratch_operands = 0 : i64, tpu.core_type = #tpu.core_type<tc>, window_params = [{transform_indices = @transform_0, window_bounds = array<i64: 8, 32>}, {pipeline_mode = #tpu.pipeline_mode<synchronous>, transform_indices = @transform_1, window_bounds = array<i64: 10, 32>}, {transform_indices = @transform_2, window_bounds = array<i64: 8, 1>}, {transform_indices = @transform_3, window_bounds = array<i64: 8, 1>}]} {
    %c0 = arith.constant 0 : index
    %c0_0 = arith.constant 0 : index
    %0 = vector.load %arg2[%c0, %c0_0] : memref<10x32xf32, #tpu.memory_space<vmem>>, vector<10x32xf32>
    %c0_1 = arith.constant 0 : index
    %c0_2 = arith.constant 0 : index
    %1 = vector.load %arg3[%c0_1, %c0_2] : memref<8x1xi32, #tpu.memory_space<vmem>>, vector<8x1xi32>
    %2 = tpu.iota {dimensions = array<i32: 1>} : vector<8x10xi32>
    %3 = vector.broadcast %1 : vector<8x1xi32> to vector<8x10xi32>
    %4 = arith.cmpi eq, %3, %2 : vector<8x10xi32>
    %5 = arith.extui %4 : vector<8x10xi1> to vector<8x10xi32>
    %6 = arith.sitofp %5 : vector<8x10xi32> to vector<8x10xf32>
    %cst = arith.constant dense<0.000000e+00> : vector<8x32xf32>
    %7 = tpu.matmul %6, %0, %cst {dimension_numbers = #tpu.dot_dimension_numbers<[1], [0], [0], [1], [0, 0, 1, 1], [], []>} : vector<8x10xf32>, vector<10x32xf32>, vector<8x32xf32> -> vector<8x32xf32>
    %c0_3 = arith.constant 0 : index
    %c0_4 = arith.constant 0 : index
    %8 = vector.load %arg1[%c0_3, %c0_4] : memref<8x32xf32, #tpu.memory_space<vmem>>, vector<8x32xf32>
    %9 = arith.subf %8, %7 : vector<8x32xf32>
    %10 = arith.mulf %9, %9 : vector<8x32xf32>
    %cst_5 = arith.constant dense<0.000000e+00> : vector<8xf32>
    %11 = vector.multi_reduction <add>, %10, %cst_5 [1] : vector<8x32xf32> to vector<8xf32>
    %12 = vector.shape_cast %11 : vector<8xf32> to vector<8x1xf32>
    %cst_6 = arith.constant 9.99999982E-15 : f32
    %13 = vector.broadcast %cst_6 : f32 to vector<8x1xf32>
    %14 = arith.addf %12, %13 : vector<8x1xf32>
    %15 = math.sqrt %14 : vector<8x1xf32>
    %c0_7 = arith.constant 0 : index
    %c0_8 = arith.constant 0 : index
    %16 = vector.load %arg4[%c0_7, %c0_8] : memref<8x1xf32, #tpu.memory_space<vmem>>, vector<8x1xf32>
    tpu.vector_store %arg4[%c0_7, %c0_8], %15 {strides = array<i32>} : memref<8x1xf32, #tpu.memory_space<vmem>>, vector<8x1xf32>,
    return
  }
  func.func @transform_0(%arg0: i32) -> (i32, i32) {
    %c0_i32 = arith.constant 0 : i32
    %c0_i32_0 = arith.constant 0 : i32
    return %arg0, %c0_i32 : i32, i32
  }
  func.func @transform_1(%arg0: i32) -> (i32, i32) {
    %c0_i32 = arith.constant 0 : i32
    %c0_i32_0 = arith.constant 0 : i32
    %c0_i32_1 = arith.constant 0 : i32
    return %c0_i32, %c0_i32_0 : i32, i32
  }
  func.func @transform_2(%arg0: i32) -> (i32, i32) {
    %c0_i32 = arith.constant 0 : i32
    %c0_i32_0 = arith.constant 0 : i32
    return %arg0, %c0_i32 : i32, i32
  }
  func.func @transform_3(%arg0: i32) -> (i32, i32) {
    %c0_i32 = arith.constant 0 : i32
    %c0_i32_0 = arith.constant 0 : i32
    return %arg0, %c0_i32 : i32, i32
  }
}

module attributes {stable_mosaic.version = 11 : i64} {
  func.func @_center_loss_kernel(%arg0: i32, %arg1: memref<8x32xf32, #tpu.memory_space<vmem>>, %arg2: memref<10x32xf32, #tpu.memory_space<vmem>>, %arg3: memref<8x1xi32, #tpu.memory_space<vmem>>, %arg4: memref<8x1xf32, #tpu.memory_space<vmem>>) attributes {dimension_semantics = [#tpu.dimension_semantics<parallel>], iteration_bounds = array<i64: 2>, scalar_prefetch = 0 : i64, scratch_operands = 0 : i64, tpu.core_type = #tpu.core_type<tc>, window_params = [{transform_indices = @transform_0, window_bounds = array<i64: 8, 32>}, {pipeline_mode = #tpu.pipeline_mode<synchronous>, transform_indices = @transform_1, window_bounds = array<i64: 10, 32>}, {transform_indices = @transform_2, window_bounds = array<i64: 8, 1>}, {transform_indices = @transform_3, window_bounds = array<i64: 8, 1>}]} {
    %c0 = arith.constant 0 : index
    %c0_0 = arith.constant 0 : index
    %0 = vector.load %arg2[%c0, %c0_0] : memref<10x32xf32, #tpu.memory_space<vmem>>, vector<10x32xf32>
    %c0_1 = arith.constant 0 : index
    %c0_2 = arith.constant 0 : index
    %1 = vector.load %arg3[%c0_1, %c0_2] : memref<8x1xi32, #tpu.memory_space<vmem>>, vector<8x1xi32>
    %2 = tpu.iota {dimensions = array<i32: 1>} : vector<8x10xi32>
    %3 = vector.broadcast %1 : vector<8x1xi32> to vector<8x10xi32>
    %4 = arith.cmpi eq, %3, %2 : vector<8x10xi32>
    %5 = arith.extui %4 : vector<8x10xi1> to vector<8x10xi32>
    %6 = arith.sitofp %5 : vector<8x10xi32> to vector<8x10xf32>
    %cst = arith.constant dense<0.000000e+00> : vector<8x32xf32>
    %7 = tpu.matmul %6, %0, %cst {dimension_numbers = #tpu.dot_dimension_numbers<[1], [0], [0], [1], [0, 0, 1, 1], [], []>} : vector<8x10xf32>, vector<10x32xf32>, vector<8x32xf32> -> vector<8x32xf32>
    %c0_3 = arith.constant 0 : index
    %c0_4 = arith.constant 0 : index
    %8 = vector.load %arg1[%c0_3, %c0_4] : memref<8x32xf32, #tpu.memory_space<vmem>>, vector<8x32xf32>
    %9 = arith.subf %8, %7 : vector<8x32xf32>
    %10 = arith.mulf %9, %9 : vector<8x32xf32>
    %cst_5 = arith.constant dense<0.000000e+00> : vector<8xf32>
    %11 = vector.multi_reduction <add>, %10, %cst_5 [1] : vector<8x32xf32> to vector<8xf32>
    %12 = vector.shape_cast %11 : vector<8xf32> to vector<8x1xf32>
    %cst_6 = arith.constant 9.99999982E-15 : f32
    %13 = vector.broadcast %cst_6 : f32 to vector<8x1xf32>
    %14 = arith.addf %12, %13 : vector<8x1xf32>
    %15 = math.sqrt %14 : vector<8x1xf32>
    %c0_7 = arith.constant 0 : index
    %c0_8 = arith.constant 0 : index
    %16 = vector.load %arg4[%c0_7, %c0_8] : memref<8x1xf32, #tpu.memory_space<vmem>>, vector<8x1xf32>
    tpu.vector_store %arg4[%c0_7, %c0_8], %15 {strides = array<i32>} : memref<8x1xf32, #tpu.memory_space<vmem>>, vector<8x1xf32>,
    return
  }
  func.func @transform_0(%arg0: i32) -> (i32, i32) {
    %c0_i32 = arith.constant 0 : i32
    %c0_i32_0 = arith.constant 0 : i32
    return %arg0, %c0_i32 : i32, i32
  }
  func.func @transform_1(%arg0: i32) -> (i32, i32) {
    %c0_i32 = arith.constant 0 : i32
    %c0_i32_0 = arith.constant 0 : i32
    %c0_i32_1 = arith.constant 0 : i32
    return %c0_i32, %c0_i32_0 : i32, i32
  }
  func.func @transform_2(%arg0: i32) -> (i32, i32) {
    %c0_i32 = arith.constant 0 : i32
    %c0_i32_0 = arith.constant 0 : i32
    return %arg0, %c0_i32 : i32, i32
  }
  func.func @transform_3(%arg0: i32) -> (i32, i32) {
    %c0_i32 = arith.constant 0 : i32
    %c0_i32_0 = arith.constant 0 : i32
    return %arg0, %c0_i32 : i32, i32
  }
}

</mosaic_0001>

<bundles_post_ra>
// kernel: tpu_custom_call.1
= control target key start
LH: loop header
LB: loop body
LE: loop exit
PB: predicated region body
PF: predicated region fallthrough
CT: control target
= control target key end

     0   :  { %8 = vsyncpa [#allocation3], 0  ;;  %s507_s12 = smov 0   ;;  %s571_s0 = inlined_call_operand.vmem [shape: f32[16,32], index: 0, kind: input, shape index: {}]   ;;  %s572_s1 = inlined_call_operand.hbm [shape: f32[10,32], index: 1, kind: input, shape index: {}]   ;;  %s573_s2 = inlined_call_operand.vmem [shape: s32[16,1], index: 2, kind: input, shape index: {}]   ;;  %s574_s3 = inlined_call_operand.vmem [shape: f32[16,1], index: 3, kind: output, shape index: {}]  }
   0x1 LB: > { %s513_s13 = sadd.s32 4294967295, %s477_s12   ;;  %p383_p0 = scmp.ge.s32.totalorder %s477_s12, 1  ;;  %s477_s12 = sphi %s507_s12, %s14_s12  }
   0x2   : > { %p118_p1 = scmp.lt.s32.totalorder %s477_s12, 3  ;;  %s479_s14 = smov [#allocation2]  }
   0x3   : > { %s130_s15 = sshll.u32 %s479_s14, 4  ;;  %p575_p3 = scmp.eq.s32.totalorder %s513_s13, 0  ;;  %s131_s15 = int_to_ptr.vmem [resolvable:$true] %s130_s15 }
   0x4   : > { %p517_p2 = pnand %p383_p0, %p118_p1  ;;  %s439_s20 = scalar_lea.hbm %s572_s1, 256 }
   0x5   : > { %p440_p6 = scmp.ne.s32.totalorder %s572_s1, %s439_s20  ;;  %p446_p10 = scmp.lt.u32.totalorder %s439_s20, %s572_s1 }
   0x6   : > { %s577_s16 = scalar_select %p517_p2, 1, 0 }
   0x7   : > { %p414_p4 = pneg %p517_p2 }
   0x9   : > { %p526_p5 = pnand %p575_p3, %p414_p4 }
   0xb   : > { %p441_p7 = pneg %p526_p5 }
   0xd   : > { %p442_p8 = pnand %p441_p7, %p440_p6 }
   0xf   : > { %p443_p9 = pneg %p442_p8 }
  0x11   : > { %p448_p11 = pnand %p446_p10, %p443_p9 }
  0x13   : > { %451 = shalt.err (!%p448_p11)
}
  0x14   : > { %s452_s25 = scalar_lea.vmem %s131_s15, 256  ;;  %p460_p1 = scmp.lt.s32.totalorder %s131_s15, %s131_s15 }
  0x15   : > { %p453_p12 = scmp.ne.s32.totalorder %s131_s15, %s452_s25  ;;  %p461_p4 = scmp.lt.s32.totalorder %s452_s25, %s452_s25 }
  0x17   : > { %p455_p13 = pnand %p453_p12, %p441_p7  ;;  %p462_p3 = por %p461_p4, %p460_p1 }
  0x19   : > { %p456_p0 = pneg %p455_p13 }
  0x1b   : > { %p463_p2 = pnand %p462_p3, %p456_p0 }
  0x1d   : > { %466 = shalt.err (!%p463_p2)
}
  0x1e   : > { %s480_s26 = smov 128   ;;  %s481_s27 = smov 8  }
  0x1f   : > { %417 = dma.hbm_to_vmem [thread:$0]  (!%p526_p5), %s572_s1, 256, %s131_s15, [#allocation3], %s480_s26, %s480_s26, %s481_s27  }
  0x20   : > { %p579_p6 = scmp.ne.s32.totalorder %s577_s16, 0 }
  0x21   : > { %p580_p8 = scmp.eq.s32.totalorder (!%p579_p6), %s513_s13, 0 }
  0x22   : > { %160 = sbr.rel (%p579_p6) target bundleno = 555 (0x22b), region = 32 }
  0x29   : > { %472 = dma.done.wait (%p580_p8), [#allocation3], 256   ;;  %p581_p7 = pmov %p580_p8 }
  0x2a   : > { %p186_p2 = scmp.lt.s32.totalorder %s513_s13, 1  ;;  %v482_v0 = vmov 0   ;;  %v483_v1 = vmov 0.0|0.0   ;;  %vm213_vm0 = vcmask 1041408   ;;  %vm484_vm1 = vmmov 1   ;;  %v198_v3 = vld [vmem:[#allocation2] sm:$0xff] }
  0x2b   : > { %474 = vsyncadd (%p581_p7), [#allocation3], 4294967040  ;;  %436 = vset.pattern.permute.xlu0 %v482_v0  ;;  %406 = vmatprep.subr.bf16.mxu0 %v483_v1  ;;  %v199_v4 = vld [vmem:[#allocation2 + $0x8] sm:$0x3]  ;;  %vm485_vm3 = vmmov 0   ;;  %v486_v6 = vmov 0.0   ;;  %v201_v7 = vlaneseq }
  0x2c   : > { %s583_s13 = smov (!%p186_p2, %s513_s13), 1  ;;  %vm408_vm2 = vmpackc.low %vm213_vm0, %vm484_vm1  ;;  %v407_v5 = vpack.c.bf16 %v199_v4, %v198_v3  ;;  %403 = vmatprep.mubr.msk.f32.mxu0 %vm485_vm3, %v486_v6  ;;  %vm209_vm4 = vcmask 80896   ;;  %vm290_vm6 = vcmask 261120   ;;  %vm302_vm7 = vcmask 7168  }
  0x2d   : > { %s554_s30 = sshll.u32 %s583_s13, 3  ;;  %v202_v8 = vand.u32 127, %v201_v7 }
  0x2e   : > { %s193_s6 = scalar_lea.vmem %s573_s2, %s554_s30  ;;  %409 = vmatpush3.bf16.msk.msra.mxu0 %vm408_vm2, %v407_v5  ;;  %s189_s9 = scalar_lea.vmem %s571_s0, %s554_s30 }
  0x2f   : > { %v200_v2 = vld [vmem:[%s193_s6] sm:$0xff]  ;;  %s197_s13 = scalar_lea.vmem %s574_s3, %s554_s30 }
  0x30   : > { %204 = vperm.xlu0 %436, %v200_v2   ;;  %v287_v11 = vld [vmem:[%s189_s9] sm:$0xff] }
  0xaf   : > { %v205_v9 = vpop.permute.xlu0 %204 }
  0xb0   : > { %vm206_vm5 = vcmp.eq.s32.totalorder %v205_v9, %v202_v8 }
  0xb1   : > { %v391_v10 = vsel %vm206_vm5, 1.0, %v486_v6 }
  0xb2   : > { %404 = vmatmul.mubr.msk.f32.vlgmr.msra.gmra.mrb[0].mxu0 %vm209_vm4, %v391_v10 }
 0x185   : > { %v283_v12 = vpop.f32.mrb[0].mxu0 }
 0x186   : > { %v288_v13 = vsub.f32 %v287_v11, %v283_v12  ;;  %v405_v14 = vpop.f32.mrb[1].mxu0 }
 0x188   : > { %v289_v15 = vmul.f32 %v288_v13, %v288_v13 }
 0x18a   : > { %v291_v16 = vsel %vm290_vm6, %v289_v15, 0.0 }
 0x18b   : > { %292 = vadd.xlane.f32.xlu0 %v291_v16 }
 0x218   : > { %v293_v17 = vpop.xlane.xlu0 %292 }
 0x219   : > { %v294_v18 = vadd.f32 1e-14, %v293_v17 }
 0x21b   : > { %437 = vrsqrt.f32 %v294_v18  ;;  %vm297_vm8 = vcmp.eq.f32.partialorder %v294_v18, inf  ;;  %v300_v21 = vand.u32 2147483648, %v294_v18  ;;  %vm299_vm9 = vcmp.eq.f32.partialorder %v294_v18, 0.0 }
 0x225   : > { %v438_v19 = vpop.eup %437 }
 0x226   : > { %v296_v20 = vmul.f32 %v438_v19, %v294_v18 }
 0x228   : > { %v298_v22 = vsel %vm297_vm8, %v294_v18, %v296_v20 }
 0x229   : > { %v301_v23 = vsel %vm299_vm9, %v300_v21, %v298_v22 }
 0x22a   : > { %303 = vst.msk [vmem:[%s197_s13] sm:$0xff] %vm302_vm7, %v301_v23 }
 0x22b PF: > { %s14_s12 = sadd.s32 1, %s477_s12  }
 0x22c   : > { %p11_p3 = scmp.ge.s32.totalorder %s14_s12, 4  }
 0x22e   :  { %13 = sbr.rel (!%p11_p3) target bundleno = 1 (0x1), region = 70 }
 0x235   :  { %323 = vsyncpa [#allocation3], 1 }
 0x236   :  { %325 = vsyncpa [#allocation3 + $0x1], 1 }

// kernel: tpu_custom_call.1
= control target key start
LH: loop header
LB: loop body
LE: loop exit
PB: predicated region body
PF: predicated region fallthrough
CT: control target
= control target key end

     0   :  { %8 = vsyncpa [#allocation3], 0  ;;  %s507_s12 = smov 0   ;;  %s571_s0 = inlined_call_operand.vmem [shape: f32[16,32], index: 0, kind: input, shape index: {}]   ;;  %s572_s1 = inlined_call_operand.hbm [shape: f32[10,32], index: 1, kind: input, shape index: {}]   ;;  %s573_s2 = inlined_call_operand.vmem [shape: s32[16,1], index: 2, kind: input, shape index: {}]   ;;  %s574_s3 = inlined_call_operand.vmem [shape: f32[16,1], index: 3, kind: output, shape index: {}]  }
   0x1 LB: > { %s513_s13 = sadd.s32 4294967295, %s477_s12   ;;  %p383_p0 = scmp.ge.s32.totalorder %s477_s12, 1  ;;  %s477_s12 = sphi %s507_s12, %s14_s12  }
   0x2   : > { %p118_p1 = scmp.lt.s32.totalorder %s477_s12, 3  ;;  %s479_s14 = smov [#allocation2]  }
   0x3   : > { %s130_s15 = sshll.u32 %s479_s14, 4  ;;  %p575_p3 = scmp.eq.s32.totalorder %s513_s13, 0  ;;  %s131_s15 = int_to_ptr.vmem [resolvable:$true] %s130_s15 }
   0x4   : > { %p517_p2 = pnand %p383_p0, %p118_p1  ;;  %s439_s20 = scalar_lea.hbm %s572_s1, 256 }
   0x5   : > { %p440_p6 = scmp.ne.s32.totalorder %s572_s1, %s439_s20  ;;  %p446_p10 = scmp.lt.u32.totalorder %s439_s20, %s572_s1 }
   0x6   : > { %s577_s16 = scalar_select %p517_p2, 1, 0 }
   0x7   : > { %p414_p4 = pneg %p517_p2 }
   0x9   : > { %p526_p5 = pnand %p575_p3, %p414_p4 }
   0xb   : > { %p441_p7 = pneg %p526_p5 }
   0xd   : > { %p442_p8 = pnand %p441_p7, %p440_p6 }
   0xf   : > { %p443_p9 = pneg %p442_p8 }
  0x11   : > { %p448_p11 = pnand %p446_p10, %p443_p9 }
  0x13   : > { %451 = shalt.err (!%p448_p11)
}
  0x14   : > { %s452_s25 = scalar_lea.vmem %s131_s15, 256  ;;  %p460_p1 = scmp.lt.s32.totalorder %s131_s15, %s131_s15 }
  0x15   : > { %p453_p12 = scmp.ne.s32.totalorder %s131_s15, %s452_s25  ;;  %p461_p4 = scmp.lt.s32.totalorder %s452_s25, %s452_s25 }
  0x17   : > { %p455_p13 = pnand %p453_p12, %p441_p7  ;;  %p462_p3 = por %p461_p4, %p460_p1 }
  0x19   : > { %p456_p0 = pneg %p455_p13 }
  0x1b   : > { %p463_p2 = pnand %p462_p3, %p456_p0 }
  0x1d   : > { %466 = shalt.err (!%p463_p2)
}
  0x1e   : > { %s480_s26 = smov 128   ;;  %s481_s27 = smov 8  }
  0x1f   : > { %417 = dma.hbm_to_vmem [thread:$0]  (!%p526_p5), %s572_s1, 256, %s131_s15, [#allocation3], %s480_s26, %s480_s26, %s481_s27  }
  0x20   : > { %p579_p6 = scmp.ne.s32.totalorder %s577_s16, 0 }
  0x21   : > { %p580_p8 = scmp.eq.s32.totalorder (!%p579_p6), %s513_s13, 0 }
  0x22   : > { %160 = sbr.rel (%p579_p6) target bundleno = 555 (0x22b), region = 32 }
  0x29   : > { %472 = dma.done.wait (%p580_p8), [#allocation3], 256   ;;  %p581_p7 = pmov %p580_p8 }
  0x2a   : > { %p186_p2 = scmp.lt.s32.totalorder %s513_s13, 1  ;;  %v482_v0 = vmov 0   ;;  %v483_v1 = vmov 0.0|0.0   ;;  %vm213_vm0 = vcmask 1041408   ;;  %vm484_vm1 = vmmov 1   ;;  %v198_v3 = vld [vmem:[#allocation2] sm:$0xff] }
  0x2b   : > { %474 = vsyncadd (%p581_p7), [#allocation3], 4294967040  ;;  %436 = vset.pattern.permute.xlu0 %v482_v0  ;;  %406 = vmatprep.subr.bf16.mxu0 %v483_v1  ;;  %v199_v4 = vld [vmem:[#allocation2 + $0x8] sm:$0x3]  ;;  %vm485_vm3 = vmmov 0   ;;  %v486_v6 = vmov 0.0   ;;  %v201_v7 = vlaneseq }
  0x2c   : > { %s583_s13 = smov (!%p186_p2, %s513_s13), 1  ;;  %vm408_vm2 = vmpackc.low %vm213_vm0, %vm484_vm1  ;;  %v407_v5 = vpack.c.bf16 %v199_v4, %v198_v3  ;;  %403 = vmatprep.mubr.msk.f32.mxu0 %vm485_vm3, %v486_v6  ;;  %vm209_vm4 = vcmask 80896   ;;  %vm290_vm6 = vcmask 261120   ;;  %vm302_vm7 = vcmask 7168  }
  0x2d   : > { %s554_s30 = sshll.u32 %s583_s13, 3  ;;  %v202_v8 = vand.u32 127, %v201_v7 }
  0x2e   : > { %s193_s6 = scalar_lea.vmem %s573_s2, %s554_s30  ;;  %409 = vmatpush3.bf16.msk.msra.mxu0 %vm408_vm2, %v407_v5  ;;  %s189_s9 = scalar_lea.vmem %s571_s0, %s554_s30 }
  0x2f   : > { %v200_v2 = vld [vmem:[%s193_s6] sm:$0xff]  ;;  %s197_s13 = scalar_lea.vmem %s574_s3, %s554_s30 }
  0x30   : > { %204 = vperm.xlu0 %436, %v200_v2   ;;  %v287_v11 = vld [vmem:[%s189_s9] sm:$0xff] }
  0xaf   : > { %v205_v9 = vpop.permute.xlu0 %204 }
  0xb0   : > { %vm206_vm5 = vcmp.eq.s32.totalorder %v205_v9, %v202_v8 }
  0xb1   : > { %v391_v10 = vsel %vm206_vm5, 1.0, %v486_v6 }
  0xb2   : > { %404 = vmatmul.mubr.msk.f32.vlgmr.msra.gmra.mrb[0].mxu0 %vm209_vm4, %v391_v10 }
 0x185   : > { %v283_v12 = vpop.f32.mrb[0].mxu0 }
 0x186   : > { %v288_v13 = vsub.f32 %v287_v11, %v283_v12  ;;  %v405_v14 = vpop.f32.mrb[1].mxu0 }
 0x188   : > { %v289_v15 = vmul.f32 %v288_v13, %v288_v13 }
 0x18a   : > { %v291_v16 = vsel %vm290_vm6, %v289_v15, 0.0 }
 0x18b   : > { %292 = vadd.xlane.f32.xlu0 %v291_v16 }
 0x218   : > { %v293_v17 = vpop.xlane.xlu0 %292 }
 0x219   : > { %v294_v18 = vadd.f32 1e-14, %v293_v17 }
 0x21b   : > { %437 = vrsqrt.f32 %v294_v18  ;;  %vm297_vm8 = vcmp.eq.f32.partialorder %v294_v18, inf  ;;  %v300_v21 = vand.u32 2147483648, %v294_v18  ;;  %vm299_vm9 = vcmp.eq.f32.partialorder %v294_v18, 0.0 }
 0x225   : > { %v438_v19 = vpop.eup %437 }
 0x226   : > { %v296_v20 = vmul.f32 %v438_v19, %v294_v18 }
 0x228   : > { %v298_v22 = vsel %vm297_vm8, %v294_v18, %v296_v20 }
 0x229   : > { %v301_v23 = vsel %vm299_vm9, %v300_v21, %v298_v22 }
 0x22a   : > { %303 = vst.msk [vmem:[%s197_s13] sm:$0xff] %vm302_vm7, %v301_v23 }
 0x22b PF: > { %s14_s12 = sadd.s32 1, %s477_s12  }
 0x22c   : > { %p11_p3 = scmp.ge.s32.totalorder %s14_s12, 4  }
 0x22e   :  { %13 = sbr.rel (!%p11_p3) target bundleno = 1 (0x1), region = 70 }
 0x235   :  { %323 = vsyncpa [#allocation3], 1 }
 0x236   :  { %325 = vsyncpa [#allocation3 + $0x1], 1 }

</bundles_post_ra>
